<compile_context>
chip_gen: v7x
topology: tpu7x:2x2x1
jax: 0.10.0
libtpu: 0.0.40
codegen_flags: <defaults>
</compile_context>

<pallas_src>
import jax
import jax.numpy as jnp
from jax.experimental import pallas as pl
from jax.experimental.pallas import tpu as pltpu

N_IN, L1, L2, N_OUT = 11, 120, 84, 7
N_OUT_PAD = 128      # lane-dense output width (avoids vst.msk partial stores)
NEG_BIG = -1e30      # bias for padded classes -> exp() == 0 in the softmax


def mlp_kernel(x_ref, w1_ref, b1_ref, w2_ref, b2_ref, w3_ref, b3_ref, o_ref):
    x = x_ref[...]

    # fc1 + ReLU
    h1 = jnp.dot(x, w1_ref[...], preferred_element_type=jnp.float32) + b1_ref[...]
    h1 = jnp.maximum(h1, 0.0)

    # fc2 + ReLU
    h2 = jnp.dot(h1, w2_ref[...], preferred_element_type=jnp.float32) + b2_ref[...]
    h2 = jnp.maximum(h2, 0.0)

    # fc3 (padded to 128 classes) + softmax over the class axis.
    # Padded classes have zero weights and a -1e30 bias, so they contribute
    # ~0 mass to the denominator and ~0 probability.
    logits = jnp.dot(h2, w3_ref[...], preferred_element_type=jnp.float32) + b3_ref[...]
    m = jnp.max(logits, axis=-1, keepdims=True)
    e = jnp.exp(logits - m)
    # Exact reciprocal keeps sum(out, axis=1) == 1 within 1e-5.
    o_ref[...] = e * pl.reciprocal(jnp.sum(e, axis=-1, keepdims=True), approx=False)


def net_forward(x, params, tile_b=1024):
    """Forward pass of Net. x: [B, 11] f32. Returns [B, 7] softmax probs."""
    w1, b1, w2, b2, w3, b3 = params
    B = x.shape[0]

    # Pad fc3 to a lane-dense 128-wide output.
    w3p = jnp.concatenate(
        [w3, jnp.zeros((w3.shape[0], N_OUT_PAD - N_OUT), w3.dtype)], axis=1)
    b3p = jnp.concatenate(
        [b3, jnp.full((1, N_OUT_PAD - N_OUT), NEG_BIG, b3.dtype)], axis=1)

    # Batch tiling: 8-aligned tile, batch padded up to a multiple of the tile.
    tile_b = max(8, min(tile_b, ((B + 7) // 8) * 8))
    B_pad = ((B + tile_b - 1) // tile_b) * tile_b
    if B_pad != B:
        x = jnp.concatenate(
            [x, jnp.zeros((B_pad - B, x.shape[1]), x.dtype)], axis=0)

    const = lambda i: (0, 0)  # weights: same block every step -> stay VMEM-resident
    out = pl.pallas_call(
        mlp_kernel,
        out_shape=jax.ShapeDtypeStruct((B_pad, N_OUT_PAD), jnp.float32),
        grid=(B_pad // tile_b,),
        in_specs=[
            pl.BlockSpec((tile_b, N_IN), lambda i: (i, 0)),   # x: tiled over batch
            pl.BlockSpec(w1.shape, const),
            pl.BlockSpec(b1.shape, const),
            pl.BlockSpec(w2.shape, const),
            pl.BlockSpec(b2.shape, const),
            pl.BlockSpec(w3p.shape, const),
            pl.BlockSpec(b3p.shape, const),
        ],
        out_specs=pl.BlockSpec((tile_b, N_OUT_PAD), lambda i: (i, 0)),
        compiler_params=pltpu.CompilerParams(
            dimension_semantics=("parallel",)),  # v7x: shard batch across both TCs
    )(x, w1, b1, w2, b2, w3p, b3p)

    return out[:B, :N_OUT]


def init_params(key, l1=L1, l2=L2, n_in=N_IN, n_out=N_OUT):
    """Deterministic PyTorch-style uniform(-1/sqrt(fan_in), 1/sqrt(fan_in)) init."""
    ks = jax.random.split(key, 6)

    def layer(kw, kb, fan_in, fan_out):
        bound = 1.0 / jnp.sqrt(fan_in)
        w = jax.random.uniform(kw, (fan_in, fan_out), jnp.float32, -bound, bound)
        b = jax.random.uniform(kb, (1, fan_out), jnp.float32, -bound, bound)
        return w, b

    w1, b1 = layer(ks[0], ks[1], n_in, l1)
    w2, b2 = layer(ks[2], ks[3], l1, l2)
    w3, b3 = layer(ks[4], ks[5], l2, n_out)
    return (w1, b1, w2, b2, w3, b3)


def reference_forward(x, params):
    w1, b1, w2, b2, w3, b3 = params
    h1 = jnp.maximum(x @ w1 + b1, 0.0)
    h2 = jnp.maximum(h1 @ w2 + b2, 0.0)
    return jax.nn.softmax(h2 @ w3 + b3, axis=1)


if __name__ == "__main__":
    key = jax.random.PRNGKey(0)
    k_x, k_p = jax.random.split(key)

    B = 8
    x = jax.random.normal(k_x, (B, N_IN), dtype=jnp.float32)
    params = init_params(k_p)

    out = net_forward(x, params)
    out = jax.block_until_ready(out)

    ref = reference_forward(x, params)
    assert out.shape == (B, N_OUT)
    assert jnp.allclose(out, ref, atol=1e-5, rtol=1e-5)
    assert jnp.allclose(jnp.sum(out, axis=1), 1.0, atol=1e-5)

    # Also exercise a batch that is not a multiple of the tile (ragged tail).
    B2 = 1000
    x2 = jax.random.normal(k_x, (B2, N_IN), dtype=jnp.float32)
    out2 = jax.block_until_ready(net_forward(x2, params, tile_b=512))
    ref2 = reference_forward(x2, params)
    assert out2.shape == (B2, N_OUT)
    assert jnp.allclose(out2, ref2, atol=1e-5, rtol=1e-5)

    print("KERNEL_OK")
</pallas_src>

<mosaic_0001>
module attributes {stable_mosaic.version = 11 : i64} {
  func.func @mlp_kernel(%arg0: i32, %arg1: memref<8x11xf32, #tpu.memory_space<vmem>>, %arg2: memref<11x120xf32, #tpu.memory_space<vmem>>, %arg3: memref<1x120xf32, #tpu.memory_space<vmem>>, %arg4: memref<120x84xf32, #tpu.memory_space<vmem>>, %arg5: memref<1x84xf32, #tpu.memory_space<vmem>>, %arg6: memref<84x128xf32, #tpu.memory_space<vmem>>, %arg7: memref<1x128xf32, #tpu.memory_space<vmem>>, %arg8: memref<8x128xf32, #tpu.memory_space<vmem>>) attributes {dimension_semantics = [#tpu.dimension_semantics<parallel>], iteration_bounds = array<i64: 1>, scalar_prefetch = 0 : i64, scratch_operands = 0 : i64, tpu.core_type = #tpu.core_type<tc>, window_params = [{transform_indices = @transform_0, window_bounds = array<i64: 8, 11>}, {pipeline_mode = #tpu.pipeline_mode<synchronous>, transform_indices = @transform_1, window_bounds = array<i64: 11, 120>}, {pipeline_mode = #tpu.pipeline_mode<synchronous>, transform_indices = @transform_2, window_bounds = array<i64: 1, 120>}, {pipeline_mode = #tpu.pipeline_mode<synchronous>, transform_indices = @transform_3, window_bounds = array<i64: 120, 84>}, {pipeline_mode = #tpu.pipeline_mode<synchronous>, transform_indices = @transform_4, window_bounds = array<i64: 1, 84>}, {pipeline_mode = #tpu.pipeline_mode<synchronous>, transform_indices = @transform_5, window_bounds = array<i64: 84, 128>}, {pipeline_mode = #tpu.pipeline_mode<synchronous>, transform_indices = @transform_6, window_bounds = array<i64: 1, 128>}, {transform_indices = @transform_7, window_bounds = array<i64: 8, 128>}]} {
    %c0 = arith.constant 0 : index
    %c0_0 = arith.constant 0 : index
    %0 = vector.load %arg1[%c0, %c0_0] : memref<8x11xf32, #tpu.memory_space<vmem>>, vector<8x11xf32>
    %c0_1 = arith.constant 0 : index
    %c0_2 = arith.constant 0 : index
    %1 = vector.load %arg2[%c0_1, %c0_2] : memref<11x120xf32, #tpu.memory_space<vmem>>, vector<11x120xf32>
    %cst = arith.constant dense<0.000000e+00> : vector<8x120xf32>
    %2 = tpu.matmul %0, %1, %cst {dimension_numbers = #tpu.dot_dimension_numbers<[1], [0], [0], [1], [0, 0, 1, 1], [], []>} : vector<8x11xf32>, vector<11x120xf32>, vector<8x120xf32> -> vector<8x120xf32>
    %c0_3 = arith.constant 0 : index
    %c0_4 = arith.constant 0 : index
    %3 = vector.load %arg3[%c0_3, %c0_4] : memref<1x120xf32, #tpu.memory_space<vmem>>, vector<1x120xf32>
    %4 = vector.broadcast %3 : vector<1x120xf32> to vector<8x120xf32>
    %5 = arith.addf %2, %4 : vector<8x120xf32>
    %cst_5 = arith.constant 0.000000e+00 : f32
    %6 = vector.broadcast %cst_5 : f32 to vector<8x120xf32>
    %7 = arith.maximumf %5, %6 : vector<8x120xf32>
    %c0_6 = arith.constant 0 : index
    %c0_7 = arith.constant 0 : index
    %8 = vector.load %arg4[%c0_6, %c0_7] : memref<120x84xf32, #tpu.memory_space<vmem>>, vector<120x84xf32>
    %cst_8 = arith.constant dense<0.000000e+00> : vector<8x84xf32>
    %9 = tpu.matmul %7, %8, %cst_8 {dimension_numbers = #tpu.dot_dimension_numbers<[1], [0], [0], [1], [0, 0, 1, 1], [], []>} : vector<8x120xf32>, vector<120x84xf32>, vector<8x84xf32> -> vector<8x84xf32>
    %c0_9 = arith.constant 0 : index
    %c0_10 = arith.constant 0 : index
    %10 = vector.load %arg5[%c0_9, %c0_10] : memref<1x84xf32, #tpu.memory_space<vmem>>, vector<1x84xf32>
    %11 = vector.broadcast %10 : vector<1x84xf32> to vector<8x84xf32>
    %12 = arith.addf %9, %11 : vector<8x84xf32>
    %cst_11 = arith.constant 0.000000e+00 : f32
    %13 = vector.broadcast %cst_11 : f32 to vector<8x84xf32>
    %14 = arith.maximumf %12, %13 : vector<8x84xf32>
    %c0_12 = arith.constant 0 : index
    %c0_13 = arith.constant 0 : index
    %15 = vector.load %arg6[%c0_12, %c0_13] : memref<84x128xf32, #tpu.memory_space<vmem>>, vector<84x128xf32>
    %cst_14 = arith.constant dense<0.000000e+00> : vector<8x128xf32>
    %16 = tpu.matmul %14, %15, %cst_14 {dimension_numbers = #tpu.dot_dimension_numbers<[1], [0], [0], [1], [0, 0, 1, 1], [], []>} : vector<8x84xf32>, vector<84x128xf32>, vector<8x128xf32> -> vector<8x128xf32>
    %c0_15 = arith.constant 0 : index
    %c0_16 = arith.constant 0 : index
    %17 = vector.load %arg7[%c0_15, %c0_16] : memref<1x128xf32, #tpu.memory_space<vmem>>, vector<1x128xf32>
    %18 = vector.broadcast %17 : vector<1x128xf32> to vector<8x128xf32>
    %19 = arith.addf %16, %18 : vector<8x128xf32>
    %cst_17 = arith.constant dense<0xFF800000> : vector<8xf32>
    %20 = vector.multi_reduction <maximumf>, %19, %cst_17 [1] : vector<8x128xf32> to vector<8xf32>
    %21 = vector.shape_cast %20 : vector<8xf32> to vector<8x1xf32>
    %22 = vector.broadcast %21 : vector<8x1xf32> to vector<8x128xf32>
    %23 = arith.subf %19, %22 : vector<8x128xf32>
    %24 = math.exp %23 : vector<8x128xf32>
    %cst_18 = arith.constant dense<0.000000e+00> : vector<8xf32>
    %25 = vector.multi_reduction <add>, %24, %cst_18 [1] : vector<8x128xf32> to vector<8xf32>
    %26 = vector.shape_cast %25 : vector<8xf32> to vector<8x1xf32>
    %27 = tpu.reciprocal %26 : vector<8x1xf32> -> vector<8x1xf32>
    %28 = vector.broadcast %27 : vector<8x1xf32> to vector<8x128xf32>
    %29 = arith.mulf %24, %28 : vector<8x128xf32>
    %c0_19 = arith.constant 0 : index
    %c0_20 = arith.constant 0 : index
    %30 = vector.load %arg8[%c0_19, %c0_20] : memref<8x128xf32, #tpu.memory_space<vmem>>, vector<8x128xf32>
    tpu.vector_store %arg8[%c0_19, %c0_20], %29 {strides = array<i32>} : memref<8x128xf32, #tpu.memory_space<vmem>>, vector<8x128xf32>,
    return
  }
  func.func @transform_0(%arg0: i32) -> (i32, i32) {
    %c0_i32 = arith.constant 0 : i32
    %c0_i32_0 = arith.constant 0 : i32
    return %arg0, %c0_i32 : i32, i32
  }
  func.func @transform_1(%arg0: i32) -> (i32, i32) {
    %c0_i32 = arith.constant 0 : i32
    %c0_i32_0 = arith.constant 0 : i32
    %c0_i32_1 = arith.constant 0 : i32
    return %c0_i32, %c0_i32_0 : i32, i32
  }
  func.func @transform_2(%arg0: i32) -> (i32, i32) {
    %c0_i32 = arith.constant 0 : i32
    %c0_i32_0 = arith.constant 0 : i32
    %c0_i32_1 = arith.constant 0 : i32
    return %c0_i32, %c0_i32_0 : i32, i32
  }
  func.func @transform_3(%arg0: i32) -> (i32, i32) {
    %c0_i32 = arith.constant 0 : i32
    %c0_i32_0 = arith.constant 0 : i32
    %c0_i32_1 = arith.constant 0 : i32
    return %c0_i32, %c0_i32_0 : i32, i32
  }
  func.func @transform_4(%arg0: i32) -> (i32, i32) {
    %c0_i32 = arith.constant 0 : i32
    %c0_i32_0 = arith.constant 0 : i32
    %c0_i32_1 = arith.constant 0 : i32
    return %c0_i32, %c0_i32_0 : i32, i32
  }
  func.func @transform_5(%arg0: i32) -> (i32, i32) {
    %c0_i32 = arith.constant 0 : i32
    %c0_i32_0 = arith.constant 0 : i32
    %c0_i32_1 = arith.constant 0 : i32
    return %c0_i32, %c0_i32_0 : i32, i32
  }
  func.func @transform_6(%arg0: i32) -> (i32, i32) {
    %c0_i32 = arith.constant 0 : i32
    %c0_i32_0 = arith.constant 0 : i32
    %c0_i32_1 = arith.constant 0 : i32
    return %c0_i32, %c0_i32_0 : i32, i32
  }
  func.func @transform_7(%arg0: i32) -> (i32, i32) {
    %c0_i32 = arith.constant 0 : i32
    %c0_i32_0 = arith.constant 0 : i32
    return %arg0, %c0_i32 : i32, i32
  }
}

</mosaic_0001>

<bundles_post_ra>
// kernel: tpu_custom_call.1
= control target key start
LH: loop header
LB: loop body
LE: loop exit
PB: predicated region body
PF: predicated region fallthrough
CT: control target
= control target key end

     0   :  { %vm41_vm0 = vcmask 1042432   ;;  %v510_v2 = vmov 0.0|0.0   ;;  %vm511_vm1 = vmmov 1   ;;  %vm512_vm3 = vmmov 0   ;;  %s684_s0 = inlined_call_operand.vmem [shape: f32[8,11], index: 0, kind: input, shape index: {}]   ;;  %s685_s1 = inlined_call_operand.vmem [shape: f32[11,120], index: 1, kind: input, shape index: {}]   ;;  %s686_s2 = inlined_call_operand.vmem [shape: f32[1,120], index: 2, kind: input, shape index: {}]   ;;  %s687_s3 = inlined_call_operand.vmem [shape: f32[120,84], index: 3, kind: input, shape index: {}]   ;;  %s688_s4 = inlined_call_operand.vmem [shape: f32[1,84], index: 4, kind: input, shape index: {}]   ;;  %s689_s5 = inlined_call_operand.vmem [shape: f32[84,128], index: 5, kind: input, shape index: {}]   ;;  %s690_s6 = inlined_call_operand.vmem [shape: f32[1,128], index: 6, kind: input, shape index: {}]   ;;  %s691_s7 = inlined_call_operand.hbm [shape: f32[8,128], index: 7, kind: output, shape index: {}]  }
   0x1   :  { %v28_v0 = vld [vmem:[%s685_s1] sm:$0xff]  ;;  %v29_v1 = vld [vmem:[%s685_s1 + $0x8] sm:$0x7]  ;;  %437 = vmatprep.subr.bf16.mxu0 %v510_v2  ;;  %vm439_vm2 = vmpackc.low %vm41_vm0, %vm511_vm1  ;;  %441 = vmatprep.subr.bf16.mxu1 %v510_v2  ;;  %v513_v5 = vmov 0.0   ;;  %vm37_vm4 = vcmask 89088  }
   0x2   :  { %v438_v3 = vpack.c.bf16 %v29_v1, %v28_v0  ;;  %v116_v4 = vld [vmem:[%s687_s3] sm:$0xff]  ;;  %376 = vmatprep.mubr.msk.f32.mxu0 %vm512_vm3, %v513_v5  ;;  %v117_v6 = vld [vmem:[%s687_s3 + $0x8] sm:$0xff]  ;;  %v118_v7 = vld [vmem:[%s687_s3 + $0x10] sm:$0xff]  ;;  %409 = vmatprep.mubr.msk.f32.mxu1 %vm512_vm3, %v513_v5 }
   0x3   :  { %v119_v8 = vld [vmem:[%s687_s3 + $0x18] sm:$0xff]  ;;  %v27_v9 = vld [vmem:[%s684_s0] sm:$0xff]  ;;  %v442_v10 = vpack.c.bf16 %v117_v6, %v116_v4  ;;  %v121_v13 = vld [vmem:[%s687_s3 + $0x28] sm:$0xff] }
   0x4   :  { %440 = vmatpush3.bf16.msk.msra.mxu0 %vm439_vm2, %v438_v3  ;;  %v445_v11 = vpack.c.bf16 %v119_v8, %v118_v7  ;;  %v120_v12 = vld [vmem:[%s687_s3 + $0x20] sm:$0xff] }
   0x5   :  { %462 = vmatprep.subr.bf16.mxu0 %v510_v2  ;;  %443 = vmatpush3.bf16.msra.mxu1 %v442_v10 }
   0x6   :  { %444 = vmatprep.subr.bf16.mxu1 %v510_v2 }
   0x7   :  { %377 = vmatmul.mubr.msk.f32.vlgmr.msra.gmra.mrb[0].mxu0 %vm37_vm4, %v27_v9 }
   0x8   :  { %12 = vsyncpa [#allocation3], 0  ;;  %434 = vmatprep.mubr.msk.f32.mxu0 %vm512_vm3, %v513_v5  ;;  %v448_v14 = vpack.c.bf16 %v121_v13, %v120_v12  ;;  %v122_v15 = vld [vmem:[%s687_s3 + $0x30] sm:$0xff]  ;;  %v123_v16 = vld [vmem:[%s687_s3 + $0x38] sm:$0xff]  ;;  %vm138_vm5 = vcmask 982016   ;;  %vm235_vm6 = vcmask 1043456  }
   0x9   :  { %446 = vmatpush3.bf16.msra.mxu1 %v445_v11  ;;  %v451_v17 = vpack.c.bf16 %v123_v16, %v122_v15  ;;  %v124_v18 = vld [vmem:[%s687_s3 + $0x40] sm:$0xff]  ;;  %v125_v19 = vld [vmem:[%s687_s3 + $0x48] sm:$0xff]  ;;  %v126_v21 = vld [vmem:[%s687_s3 + $0x50] sm:$0xff]  ;;  %vm231_vm7 = vcmask 687104  }
   0xa   :  { %447 = vmatprep.subr.bf16.mxu1 %v510_v2  ;;  %v454_v20 = vpack.c.bf16 %v125_v19, %v124_v18  ;;  %v127_v22 = vld [vmem:[%s687_s3 + $0x58] sm:$0xff]  ;;  %v128_v24 = vld [vmem:[%s687_s3 + $0x60] sm:$0xff]  ;;  %v129_v25 = vld [vmem:[%s687_s3 + $0x68] sm:$0xff] }
   0xb   :  { %v457_v23 = vpack.c.bf16 %v127_v22, %v126_v21  ;;  %v460_v26 = vpack.c.bf16 %v129_v25, %v128_v24  ;;  %v130_v27 = vld [vmem:[%s687_s3 + $0x70] sm:$0xff]  ;;  %v213_v28 = vld [vmem:[%s689_s5] sm:$0xff]  ;;  %v214_v29 = vld [vmem:[%s689_s5 + $0x8] sm:$0xff] }
   0xc   :  { %v215_v30 = vld [vmem:[%s689_s5 + $0x10] sm:$0xff]  ;;  %v463_v31 = vpack.c.bf16 %v214_v29, %v213_v28  ;;  %v216_v32 = vld [vmem:[%s689_s5 + $0x18] sm:$0xff]  ;;  %v217_v34 = vld [vmem:[%s689_s5 + $0x20] sm:$0xff] }
   0xd   :  { %449 = vmatpush3.bf16.msra.mxu1 %v448_v14  ;;  %v466_v33 = vpack.c.bf16 %v216_v32, %v215_v30  ;;  %v218_v35 = vld [vmem:[%s689_s5 + $0x28] sm:$0xff]  ;;  %v219_v37 = vld [vmem:[%s689_s5 + $0x30] sm:$0xff]  ;;  %v220_v38 = vld [vmem:[%s689_s5 + $0x38] sm:$0xff] }
   0xe   :  { %450 = vmatprep.subr.bf16.mxu1 %v510_v2  ;;  %464 = vmatpush3.bf16.msra.mxu0 %v463_v31  ;;  %v469_v36 = vpack.c.bf16 %v218_v35, %v217_v34  ;;  %v472_v39 = vpack.c.bf16 %v220_v38, %v219_v37  ;;  %v333_v40 = vld [vmem:[%s686_s2] ss:$0 sm:$0xff]  ;;  %v222_v46 = vld [vmem:[%s689_s5 + $0x48] sm:$0xff]  ;;  %v223_v48 = vld [vmem:[%s689_s5 + $0x50] sm:$0xf] }
   0xf   :  { %465 = vmatprep.subr.bf16.mxu0 %v510_v2  ;;  %v221_v45 = vld [vmem:[%s689_s5 + $0x40] sm:$0xff] }
  0x10   :  { %v475_v47 = vpack.c.bf16 %v222_v46, %v221_v45  ;;  %v336_v49 = vld [vmem:[%s688_s4] ss:$0 sm:$0xff]  ;;  %s514_s4 = smov [#allocation2]  }
  0x11   :  { %452 = vmatpush3.bf16.msra.mxu1 %v451_v17  ;;  %v338_v54 = vld [vmem:[%s690_s6] ss:$0 sm:$0xff]  ;;  %s325_s5 = sshll.u32 %s514_s4, 4  ;;  %s326_s5 = int_to_ptr.vmem [resolvable:$true] %s325_s5 }
  0x12   :  { %453 = vmatprep.subr.bf16.mxu1 %v510_v2  ;;  %467 = vmatpush3.bf16.msra.mxu0 %v466_v33  ;;  %s486_s12 = scalar_lea.vmem %s326_s5, 128  ;;  %p491_p1 = scmp.lt.s32.totalorder %s326_s5, %s326_s5 }
  0x13   :  { %468 = vmatprep.subr.bf16.mxu0 %v510_v2  ;;  %p487_p0 = scmp.ne.s32.totalorder %s326_s5, %s486_s12  ;;  %p492_p2 = scmp.lt.s32.totalorder %s486_s12, %s486_s12 }
  0x15   :  { %455 = vmatpush3.bf16.msra.mxu1 %v454_v20  ;;  %p493_p3 = por %p492_p2, %p491_p1 }
  0x16   :  { %456 = vmatprep.subr.bf16.mxu1 %v510_v2  ;;  %470 = vmatpush3.bf16.msra.mxu0 %v469_v36 }
  0x17   :  { %471 = vmatprep.subr.bf16.mxu0 %v510_v2  ;;  %p494_p4 = pnand %p493_p3, %p487_p0 }
  0x19   :  { %458 = vmatpush3.bf16.msra.mxu1 %v457_v23 }
  0x1a   :  { %459 = vmatprep.subr.bf16.mxu1 %v510_v2  ;;  %473 = vmatpush3.bf16.msra.mxu0 %v472_v39 }
  0x1b   :  { %474 = vmatprep.subr.bf16.mxu0 %v510_v2 }
  0x1d   :  { %461 = vmatpush3.bf16.msra.mxu1 %v460_v26 }
  0x1e   :  { %407 = vmatprep.subr.mxu1 %v513_v5  ;;  %476 = vmatpush3.bf16.msra.mxu0 %v475_v47 }
  0x1f   :  { %432 = vmatprep.subr.mxu0 %v513_v5 }
  0x21   :  { %408 = vmatpush3.msra.mxu1 %v130_v27 }
  0x22   :  { %433 = vmatpush3.msk.msra.mxu0 %vm235_vm6, %v223_v48 }
  0xda   :  { %v111_v41 = vpop.f32.mrb[0].mxu0 }
  0xdb   :  { %v112_v42 = vadd.f32 %v333_v40, %v111_v41  ;;  %v378_v43 = vpop.f32.mrb[1].mxu0 }
  0xdd   :  { %v115_v44 = vmax.f32 %v112_v42, 0.0 }
  0xdf   :  { %410 = vmatmul.mubr.msk.f32.vlgmr.msra.gmra.mrb[0].mxu1 %vm138_vm5, %v115_v44 }
 0x1b2   :  { %v208_v50 = vpop.f32.mrb[0].mxu1 }
 0x1b3   :  { %v209_v51 = vadd.f32 %v336_v49, %v208_v50  ;;  %v411_v52 = vpop.f32.mrb[1].mxu1 }
 0x1b5   :  { %v212_v53 = vmax.f32 %v209_v51, 0.0 }
 0x1b7   :  { %435 = vmatmul.mubr.msk.f32.vlgmr.msra.gmra.mrb[2].mxu0 %vm231_vm7, %v212_v53 }
 0x28a   :  { %v305_v55 = vpop.f32.mrb[2].mxu0 }
 0x28b   :  { %v306_v56 = vadd.f32 %v338_v54, %v305_v55  ;;  %v436_v57 = vpop.f32.mrb[3].mxu0 }
 0x28d   :  { %309 = vmax.xlane.f32.xlu0 %v306_v56 }
 0x31a   :  { %v310_v58 = vpop.xlane.xlu0 %309 }
 0x31b   :  { %v311_v59 = vsub.f32 %v306_v56, %v310_v58 }
 0x31d   :  { %v312_v60 = vmul.f32 1.442695, %v311_v59 }
 0x31f   :  { %482 = vpow2.f32 %v312_v60 }
 0x329   :  { %v483_v61 = vpop.eup %482 }
 0x32a   :  { %314 = vadd.xlane.f32.xlu0 %v483_v61 }
 0x3b7   :  { %v315_v62 = vpop.xlane.xlu0 %314 }
 0x3b8   :  { %484 = vrcp.f32 %v315_v62 }
 0x3c2   :  { %v485_v63 = vpop.eup %484 }
 0x3c3   :  { %v317_v0 = vmul.f32 %v485_v63, %v483_v61 }
 0x3c5   :  { %318 = vst [vmem:[#allocation2] sm:$0xff] %v317_v0 }
 0x3c6   :  { %497 = shalt.err (!%p494_p4)
}
 0x3c7   :  { %s498_s14 = scalar_lea.hbm %s691_s7, 128 }
 0x3c8   :  { %p499_p5 = scmp.ne.s32.totalorder %s691_s7, %s498_s14  ;;  %p502_p6 = scmp.lt.u32.totalorder %s498_s14, %s691_s7 }
 0x3ca   :  { %p504_p7 = pnand %p502_p6, %p499_p5 }
 0x3cc   :  { %507 = shalt.err (!%p504_p7)
}
 0x3cd   :  { %328 = dma.vmem_to_hbm [thread:$0]  %s326_s5, 128, %s691_s7, [#allocation3]  }
 0x3ce   :  { %508 = dma.done.wait [#allocation3], 128  }
 0x3cf   :  { %509 = vsyncadd [#allocation3], 4294967168 }
 0x3d0   :  { %332 = vsyncpa [#allocation3], 1 }

</bundles_post_ra>
